<compile_context>
chip_gen: v6e
topology: v6e:2x2x1
jax: 0.10.0
libtpu: 0.0.40
codegen_flags: <defaults>
</compile_context>

<pallas_src>
import functools

import jax
import jax.numpy as jnp
from jax.experimental import pallas as pl
from jax.experimental.pallas import tpu as pltpu


def _round_up(x, m):
    return ((x + m - 1) // m) * m


def _pick_col_tile(woc_pad, max_lanes=2048):
    """Largest multiple-of-128 divisor of woc_pad that is <= max_lanes."""
    best, t = 128, 128
    while t <= min(woc_pad, max_lanes):
        if woc_pad % t == 0:
            best = t
        t += 128
    return best


def _conv_bn_relu_kernel(x_ref, w_ref, shift_ref, o_ref, *, K, stride, H_out,
                         WpC_pad, use_relu):
    # x_ref    : (B, Hp, WpC_pad)        bf16  lane-packed padded images (W,Cin folded)
    # w_ref    : (K*WpC_pad, col_tile)   bf16  block-structured, BN-scale folded
    # shift_ref: (1, col_tile)           f32   BN shift tiled per output column
    # o_ref    : (B, H_out, col_tile)          lane-dense output tile
    B = x_ref.shape[0]
    col = o_ref.shape[-1]
    M = B * H_out
    row_span = (H_out - 1) * stride + 1

    if stride == 1:
        x = x_ref[...]                               # stay bf16: no round-trip, no concat
    else:
        # Lossless upcast only for sublane-strided slicing robustness; the MXU
        # still consumes bf16 below.
        x = x_ref[...].astype(jnp.float32)

    # K accumulating MXU matmuls (K <= 3: static unroll), f32 accumulation.
    acc = jnp.zeros((M, col), jnp.float32)
    for kh in range(K):
        slab = x[:, kh:kh + row_span:stride, :].reshape(M, WpC_pad)
        wk = w_ref[pl.ds(kh * WpC_pad, WpC_pad), :]
        acc = acc + jnp.dot(slab.astype(jnp.bfloat16), wk,
                            preferred_element_type=jnp.float32)

    y = acc + shift_ref[...]                         # fused BN shift
    if use_relu:
        y = jnp.maximum(y, 0.0)
    o_ref[...] = y.reshape(B, H_out, col).astype(o_ref.dtype)   # lane-dense store


def prepare_basic_conv_t(weight_oihw, bn_gamma=None, bn_beta=None, bn_mean=None,
                         bn_var=None, conv_bias=None, *, H, W, stride=1, padding=0,
                         bn=True, eps=1e-5):
    """Weights-only work, hoisted out of the per-call path (run once per layer):
    fold eval-mode BN scale into the conv weights and build the block-structured
    weight matrix W_big plus the per-output-column BN shift."""
    Cout, Cin, K, K2 = weight_oihw.shape
    assert K == K2, "non-square kernels not supported"
    W_out = (W + 2 * padding - K) // stride + 1
    Wp = W + 2 * padding
    WpC = Wp * Cin
    WpC_pad = _round_up(WpC, 128)
    WoC = W_out * Cout
    WoC_pad = _round_up(WoC, 128)

    if bn:
        scale = bn_gamma / jnp.sqrt(bn_var + eps)
        shift = bn_beta - bn_mean * scale
    else:
        scale = jnp.ones((Cout,), jnp.float32)
        shift = jnp.zeros((Cout,), jnp.float32)
    if conv_bias is not None:
        shift = shift + conv_bias * scale

    w_hwio = jnp.transpose(weight_oihw, (2, 3, 1, 0)).astype(jnp.float32)
    w_hwio = w_hwio * scale[None, None, None, :]     # BN scale folded into weights

    # W_big[kh*WpC_pad + wp*Cin + ci, w*Cout + co] = w_hwio[kh, wp - w*stride, ci, co]
    wp_idx = jnp.arange(Wp)[:, None]                 # (Wp, 1)
    w_idx = jnp.arange(W_out)[None, :]               # (1, W_out)
    kw = wp_idx - w_idx * stride                     # (Wp, W_out)
    valid = (kw >= 0) & (kw < K)
    w_blocks = w_hwio[:, jnp.clip(kw, 0, K - 1)]     # (K, Wp, W_out, Cin, Cout)
    w_blocks = jnp.where(valid[None, :, :, None, None], w_blocks, 0.0)
    w_blocks = jnp.transpose(w_blocks, (0, 1, 3, 2, 4)).reshape(K, WpC, WoC)
    w_big = jnp.pad(w_blocks, ((0, 0), (0, WpC_pad - WpC), (0, WoC_pad - WoC)))
    w_big = w_big.reshape(K * WpC_pad, WoC_pad).astype(jnp.bfloat16)

    shift_wide = jnp.tile(shift.astype(jnp.float32), W_out)     # (W_out*Cout,)
    shift_wide = jnp.pad(shift_wide, (0, WoC_pad - WoC)).reshape(1, WoC_pad)
    return w_big, shift_wide


@functools.partial(jax.jit,
                   static_argnames=("Cout", "K", "stride", "padding", "relu", "out_dtype"))
def basic_conv_t_apply(x_nchw, w_big, shift_wide, *, Cout, K, stride=1, padding=0,
                       relu=True, out_dtype=jnp.float32):
    """Forward of BasicConv_T. x_nchw: (N, Cin, H, W) float32. Returns NCHW float32.

    When chaining BasicConv blocks, pass out_dtype=jnp.bfloat16 and keep the
    lane-packed (N, H_out, W_out*Cout) slab (skip the final reshape/transpose)
    to avoid an HBM round-trip; kept NCHW/f32 here to match the reference."""
    N, Cin, H, W = x_nchw.shape
    H_out = (H + 2 * padding - K) // stride + 1
    W_out = (W + 2 * padding - K) // stride + 1
    Hp, Wp = H + 2 * padding, W + 2 * padding
    WpC = Wp * Cin
    WpC_pad = _round_up(WpC, 128)
    WoC = W_out * Cout
    WoC_pad = w_big.shape[1]
    assert w_big.shape[0] == K * WpC_pad and WoC_pad == _round_up(WoC, 128)

    # ---- batch images along the matmul M dimension: M = B*H_out ~ 256 rows ----
    B = max(1, min(N,
                   -(-256 // H_out),                          # fill ~256 MXU rows
                   (4 << 20) // max(1, Hp * WpC_pad * 2)))    # cap x block at ~4 MiB
    N_pad = -(-N // B) * B

    # ---- input: NCHW -> lane-packed (N_pad, Hp, WpC_pad) bf16 ----
    x = jnp.transpose(x_nchw, (0, 2, 3, 1)).astype(jnp.float32)
    x = jnp.pad(x, ((0, N_pad - N), (padding, padding), (padding, padding), (0, 0)))
    x = x.reshape(N_pad, Hp, WpC)
    x = jnp.pad(x, ((0, 0), (0, 0), (0, WpC_pad - WpC))).astype(jnp.bfloat16)

    # ---- column tiling: W_big streams through VMEM in <=2048-lane tiles ----
    col_tile = _pick_col_tile(WoC_pad)
    n_col = WoC_pad // col_tile
    n_grp = N_pad // B

    out_itemsize = jnp.dtype(out_dtype).itemsize
    per_step_bytes = (
        2 * B * Hp * WpC_pad * 2                      # x block (double-buffered, bf16)
        + 2 * K * WpC_pad * col_tile * 2              # weight tile (double-buffered, bf16)
        + 2 * col_tile * 4                            # shift tile
        + 2 * B * H_out * col_tile * out_itemsize     # output tile
        + 2 * B * H_out * col_tile * 4                # f32 accumulator + temporaries
    )
    vmem_limit = None
    if per_step_bytes > (14 << 20):                   # v5e default scoped VMEM is 16 MiB
        vmem_limit = int(min(per_step_bytes + (4 << 20), 100 << 20))

    kernel = functools.partial(_conv_bn_relu_kernel, K=K, stride=stride,
                               H_out=H_out, WpC_pad=WpC_pad, use_relu=relu)

    out = pl.pallas_call(
        kernel,
        out_shape=jax.ShapeDtypeStruct((N_pad, H_out, WoC_pad), out_dtype),
        grid_spec=pltpu.PrefetchScalarGridSpec(
            num_scalar_prefetch=0,
            grid=(n_grp, n_col),
            in_specs=[
                pl.BlockSpec((B, Hp, WpC_pad), lambda g, j: (g, 0, 0)),
                pl.BlockSpec((K * WpC_pad, col_tile), lambda g, j: (0, j)),
                pl.BlockSpec((1, col_tile), lambda g, j: (0, j)),
            ],
            out_specs=pl.BlockSpec((B, H_out, col_tile), lambda g, j: (g, 0, j)),
        ),
        compiler_params=pltpu.CompilerParams(
            dimension_semantics=("parallel", "parallel"),
            vmem_limit_bytes=vmem_limit),
    )(x, w_big, shift_wide)

    out = out[:N, :, :WoC].astype(jnp.float32)
    out = out.reshape(N, H_out, W_out, Cout)
    return jnp.transpose(out, (0, 3, 1, 2))           # back to NCHW


def _reference(x_nchw, weight_oihw, gamma, beta, mean, var,
               *, stride, padding, relu, bn, eps=1e-5):
    y = jax.lax.conv_general_dilated(
        x_nchw, weight_oihw, window_strides=(stride, stride),
        padding=[(padding, padding), (padding, padding)],
        dimension_numbers=("NCHW", "OIHW", "NCHW"))
    if bn:
        s = (gamma / jnp.sqrt(var + eps)).reshape(1, -1, 1, 1)
        b = (beta - mean * gamma / jnp.sqrt(var + eps)).reshape(1, -1, 1, 1)
        y = y * s + b
    if relu:
        y = jnp.maximum(y, 0.0)
    return y


if __name__ == "__main__":
    key = jax.random.PRNGKey(0)
    k_x, k_w, k_g, k_b, k_m, k_v = jax.random.split(key, 6)

    # BasicConv_T(in_planes=4, out_planes=8, kernel_size=3, stride=1, padding=1)
    N, Cin, H, W = 2, 4, 16, 16
    Cout, K, stride, padding = 8, 3, 1, 1
    relu, bn = True, True

    x = jax.random.normal(k_x, (N, Cin, H, W), dtype=jnp.float32)
    weight = jax.random.normal(k_w, (Cout, Cin, K, K), dtype=jnp.float32) * 0.1
    gamma = 1.0 + 0.1 * jax.random.normal(k_g, (Cout,), dtype=jnp.float32)
    beta = 0.1 * jax.random.normal(k_b, (Cout,), dtype=jnp.float32)
    running_mean = 0.1 * jax.random.normal(k_m, (Cout,), dtype=jnp.float32)
    running_var = jnp.abs(jax.random.normal(k_v, (Cout,), dtype=jnp.float32)) + 0.5

    # Weight-side work (BN fold + block-structured W_big) hoisted: runs once.
    w_big, shift_wide = jax.block_until_ready(prepare_basic_conv_t(
        weight, gamma, beta, running_mean, running_var, None,
        H=H, W=W, stride=stride, padding=padding, bn=bn))

    out = basic_conv_t_apply(x, w_big, shift_wide, Cout=Cout, K=K, stride=stride,
                             padding=padding, relu=relu)
    out = jax.block_until_ready(out)

    ref = _reference(x, weight, gamma, beta, running_mean, running_var,
                     stride=stride, padding=padding, relu=relu, bn=bn)
    assert out.shape == (N, Cout, H, W)
    # bf16 MXU inputs (f32 accumulation) -> looser tolerance than a pure-f32 path.
    assert jnp.allclose(out, ref, atol=5e-2, rtol=5e-2), "mismatch vs reference"

    print("KERNEL_OK")
</pallas_src>

<mosaic_0001>
module attributes {stable_mosaic.version = 11 : i64} {
  func.func @_conv_bn_relu_kernel(%arg0: i32, %arg1: i32, %arg2: memref<2x18x128xbf16, #tpu.memory_space<vmem>>, %arg3: memref<384x128xbf16, #tpu.memory_space<vmem>>, %arg4: memref<1x128xf32, #tpu.memory_space<vmem>>, %arg5: memref<2x16x128xf32, #tpu.memory_space<vmem>>) attributes {dimension_semantics = [#tpu.dimension_semantics<parallel>, #tpu.dimension_semantics<parallel>], iteration_bounds = array<i64: 1, 1>, scalar_prefetch = 0 : i64, scratch_operands = 0 : i64, tpu.core_type = #tpu.core_type<tc>, window_params = [{transform_indices = @transform_0, window_bounds = array<i64: 2, 18, 128>}, {transform_indices = @transform_1, window_bounds = array<i64: 384, 128>}, {transform_indices = @transform_2, window_bounds = array<i64: 1, 128>}, {transform_indices = @transform_3, window_bounds = array<i64: 2, 16, 128>}]} {
    %c0 = arith.constant 0 : index
    %c0_0 = arith.constant 0 : index
    %c0_1 = arith.constant 0 : index
    %0 = vector.load %arg2[%c0, %c0_0, %c0_1] : memref<2x18x128xbf16, #tpu.memory_space<vmem>>, vector<2x18x128xbf16>
    %cst = arith.constant 0.000000e+00 : f32
    %1 = vector.broadcast %cst : f32 to vector<32x128xf32>
    %2 = vector.extract_strided_slice %0 {offsets = [0, 0, 0], sizes = [2, 16, 128], strides = [1, 1, 1]} : vector<2x18x128xbf16> to vector<2x16x128xbf16>
    %3 = vector.shape_cast %2 : vector<2x16x128xbf16> to vector<32x128xbf16>
    %c0_2 = arith.constant 0 : index
    %c0_3 = arith.constant 0 : index
    %4 = vector.load %arg3[%c0_2, %c0_3] : memref<384x128xbf16, #tpu.memory_space<vmem>>, vector<128x128xbf16>
    %cst_4 = arith.constant dense<0.000000e+00> : vector<32x128xf32>
    %5 = tpu.matmul %3, %4, %cst_4 {dimension_numbers = #tpu.dot_dimension_numbers<[1], [0], [0], [1], [0, 0, 1, 1], [], []>} : vector<32x128xbf16>, vector<128x128xbf16>, vector<32x128xf32> -> vector<32x128xf32>
    %6 = arith.addf %1, %5 : vector<32x128xf32>
    %7 = vector.extract_strided_slice %0 {offsets = [0, 1, 0], sizes = [2, 16, 128], strides = [1, 1, 1]} : vector<2x18x128xbf16> to vector<2x16x128xbf16>
    %8 = vector.shape_cast %7 : vector<2x16x128xbf16> to vector<32x128xbf16>
    %c128 = arith.constant 128 : index
    %c0_5 = arith.constant 0 : index
    %9 = vector.load %arg3[%c128, %c0_5] : memref<384x128xbf16, #tpu.memory_space<vmem>>, vector<128x128xbf16>
    %cst_6 = arith.constant dense<0.000000e+00> : vector<32x128xf32>
    %10 = tpu.matmul %8, %9, %cst_6 {dimension_numbers = #tpu.dot_dimension_numbers<[1], [0], [0], [1], [0, 0, 1, 1], [], []>} : vector<32x128xbf16>, vector<128x128xbf16>, vector<32x128xf32> -> vector<32x128xf32>
    %11 = arith.addf %6, %10 : vector<32x128xf32>
    %12 = vector.extract_strided_slice %0 {offsets = [0, 2, 0], sizes = [2, 16, 128], strides = [1, 1, 1]} : vector<2x18x128xbf16> to vector<2x16x128xbf16>
    %13 = vector.shape_cast %12 : vector<2x16x128xbf16> to vector<32x128xbf16>
    %c256 = arith.constant 256 : index
    %c0_7 = arith.constant 0 : index
    %14 = vector.load %arg3[%c256, %c0_7] : memref<384x128xbf16, #tpu.memory_space<vmem>>, vector<128x128xbf16>
    %cst_8 = arith.constant dense<0.000000e+00> : vector<32x128xf32>
    %15 = tpu.matmul %13, %14, %cst_8 {dimension_numbers = #tpu.dot_dimension_numbers<[1], [0], [0], [1], [0, 0, 1, 1], [], []>} : vector<32x128xbf16>, vector<128x128xbf16>, vector<32x128xf32> -> vector<32x128xf32>
    %16 = arith.addf %11, %15 : vector<32x128xf32>
    %c0_9 = arith.constant 0 : index
    %c0_10 = arith.constant 0 : index
    %17 = vector.load %arg4[%c0_9, %c0_10] : memref<1x128xf32, #tpu.memory_space<vmem>>, vector<1x128xf32>
    %18 = vector.broadcast %17 : vector<1x128xf32> to vector<32x128xf32>
    %19 = arith.addf %16, %18 : vector<32x128xf32>
    %cst_11 = arith.constant 0.000000e+00 : f32
    %20 = vector.broadcast %cst_11 : f32 to vector<32x128xf32>
    %21 = arith.maximumf %19, %20 : vector<32x128xf32>
    %22 = vector.shape_cast %21 : vector<32x128xf32> to vector<2x16x128xf32>
    %c0_12 = arith.constant 0 : index
    %c0_13 = arith.constant 0 : index
    %c0_14 = arith.constant 0 : index
    %23 = vector.load %arg5[%c0_12, %c0_13, %c0_14] : memref<2x16x128xf32, #tpu.memory_space<vmem>>, vector<2x16x128xf32>
    tpu.vector_store %arg5[%c0_12, %c0_13, %c0_14], %22 {strides = array<i32>} : memref<2x16x128xf32, #tpu.memory_space<vmem>>, vector<2x16x128xf32>,
    return
  }
  func.func @transform_0(%arg0: i32, %arg1: i32) -> (i32, i32, i32) {
    %c0_i32 = arith.constant 0 : i32
    %c0_i32_0 = arith.constant 0 : i32
    %c0_i32_1 = arith.constant 0 : i32
    return %arg0, %c0_i32, %c0_i32_0 : i32, i32, i32
  }
  func.func @transform_1(%arg0: i32, %arg1: i32) -> (i32, i32) {
    %c0_i32 = arith.constant 0 : i32
    %c0_i32_0 = arith.constant 0 : i32
    return %c0_i32, %arg1 : i32, i32
  }
  func.func @transform_2(%arg0: i32, %arg1: i32) -> (i32, i32) {
    %c0_i32 = arith.constant 0 : i32
    %c0_i32_0 = arith.constant 0 : i32
    return %c0_i32, %arg1 : i32, i32
  }
  func.func @transform_3(%arg0: i32, %arg1: i32) -> (i32, i32, i32) {
    %c0_i32 = arith.constant 0 : i32
    %c0_i32_0 = arith.constant 0 : i32
    return %arg0, %c0_i32, %arg1 : i32, i32, i32
  }
}

</mosaic_0001>

<bundles_post_ra>
// kernel: basic_conv_t_apply.1
= control target key start
LH: loop header
LB: loop body
LE: loop exit
PB: predicated region body
PF: predicated region fallthrough
CT: control target
= control target key end

     0   :  { %vm37_vm0 = vsmask.f32 3328  ;;  %vm38_vm1 = vsmask.f32 7440  ;;  %vm320_vm2 = vcmask 1042432   ;;  %vm321_vm4 = vcmask 1046532   ;;  %s819_s1 = inlined_call_operand.vmem [shape: bf16[384,128], index: 1, kind: input, shape index: {}]   ;;  %s820_s0 = inlined_call_operand.vmem [shape: bf16[2,18,128], index: 0, kind: input, shape index: {}]   ;;  %s821_s2 = inlined_call_operand.vmem [shape: f32[1,128], index: 2, kind: input, shape index: {}]   ;;  %s822_s3 = inlined_call_operand.vmem [shape: f32[2,16,128], index: 3, kind: output, shape index: {}]  }
   0x1   :  { %v608_v0 = vld [vmem:[%s819_s1 + $0x78] sm:$0xff]   ;;  %v610_v2 = vld [vmem:[%s819_s1 + $0x70] sm:$0xff]   ;;  %v612_v4 = vld [vmem:[%s819_s1 + $0x68] sm:$0xff]  }
   0x2   :  { %v609_v1 = vld [vmem:[%s819_s1 + $0x38] sm:$0xff]   ;;  %548 = vmatprep.subr.bf16.mxu0 %v608_v0  ;;  %v611_v3 = vld [vmem:[%s819_s1 + $0x30] sm:$0xff]   ;;  %v613_v5 = vld [vmem:[%s819_s1 + $0x28] sm:$0xff]  }
   0x3   :  { %568 = vmatprep.subr.bf16.mxu1 %v609_v1  ;;  %549 = vmatpush3.bf16.msra.mxu0 %v608_v0  ;;  %v614_v6 = vld [vmem:[%s819_s1 + $0x60] sm:$0xff]   ;;  %v616_v8 = vld [vmem:[%s819_s1 + $0x58] sm:$0xff]   ;;  %v618_v10 = vld [vmem:[%s819_s1 + $0x50] sm:$0xff]  }
   0x4   :  { %569 = vmatpush3.bf16.msra.mxu1 %v609_v1  ;;  %550 = vmatprep.subr.bf16.mxu0 %v610_v2  ;;  %v615_v7 = vld [vmem:[%s819_s1 + $0x20] sm:$0xff]   ;;  %v617_v9 = vld [vmem:[%s819_s1 + $0x18] sm:$0xff]   ;;  %v619_v11 = vld [vmem:[%s819_s1 + $0x10] sm:$0xff]  }
   0x5   :  { %570 = vmatprep.subr.bf16.mxu1 %v611_v3  ;;  %v693_v12 = vld [vmem:[%s820_s0] sm:$0xf]  ;;  %v698_v13 = vld [vmem:[%s820_s0 + $0x4] sm:$0xf]  ;;  %v703_v14 = vld [vmem:[%s820_s0 + $0x8] sm:$0x1] }
   0x6   :  { %v41_v15 = vshrl.u32 %v693_v12, 16  ;;  %v44_v16 = vshll.u32 %v693_v12, 16  ;;  %v50_v17 = vshll.u32 %v698_v13, 16  ;;  %v54_v18 = vshrl.u32 %v698_v13, 16  ;;  %v712_v19 = vld [vmem:[%s820_s0 + $0xc] sm:$0xf]  ;;  %vm740_vm3 = vmor %vm37_vm0, %vm38_vm1 }
   0x7   :  { %551 = vmatpush3.bf16.msra.mxu0 %v610_v2  ;;  %v620_v20 = vld [vmem:[%s819_s1 + $0x48] sm:$0xff]   ;;  %v60_v21 = vshll.u32 %v703_v14, 16  ;;  %v495_v22 = vcombine.low %v693_v12, %v698_v13  ;;  %v723_v23 = vld [vmem:[%s820_s0 + $0x10] sm:$0xf]  ;;  %v728_v24 = vld [vmem:[%s820_s0 + $0x14] sm:$0x1] }
   0x8   :  { %571 = vmatpush3.bf16.msra.mxu1 %v611_v3  ;;  %552 = vmatprep.subr.bf16.mxu0 %v612_v4  ;;  %v43_v25 = vrot.slane %v41_v15, 4  ;;  %v46_v26 = vrot.slane %v44_v16, 5  ;;  %v52_v27 = vrot.slane %v50_v17, 5  ;;  %v56_v28 = vrot.slane %v54_v18, 4  ;;  %v621_v33 = vld [vmem:[%s819_s1 + $0x8] sm:$0xff]   ;;  %v622_v42 = vld [vmem:[%s819_s1 + $0x40] sm:$0xff]   ;;  %vm759_vm5 = vmor %vm320_vm2, %vm321_vm4 }
   0x9   :  { %572 = vmatprep.subr.bf16.mxu1 %v613_v5  ;;  %v62_v29 = vrot.slane %v60_v21, 5  ;;  %v65_v30 = vshrl.u32 %v712_v19, 16  ;;  %v68_v31 = vshll.u32 %v712_v19, 16  ;;  %v74_v32 = vshll.u32 %v723_v23, 16  ;;  %584 = vmatprep.mubr.bf16.mxu1 %v495_v22  ;;  %v623_v49 = vld [vmem:[%s819_s1] sm:$0xff]   ;;  %v626_v60 = vld [vmem:[%s819_s1 + $0xb8] sm:$0xff]  }
   0xa   :  { %v47_v34 = vor.u32 %v46_v26, %v43_v25  ;;  %v57_v35 = vor.u32 %v56_v28, %v52_v27  ;;  %v78_v36 = vshrl.u32 %v723_v23, 16  ;;  %v84_v37 = vshll.u32 %v728_v24, 16  ;;  %v627_v3 = vld [vmem:[%s819_s1 + $0xb0] sm:$0xff]  }
   0xb   :  { %553 = vmatpush3.bf16.msra.mxu0 %v612_v4  ;;  %v67_v39 = vrot.slane %v65_v30, 4  ;;  %v70_v40 = vrot.slane %v68_v31, 5  ;;  %v76_v41 = vrot.slane %v74_v32, 5  ;;  %v505_v48 = vrot.slane %v693_v12, 9 }
   0xc   :  { %573 = vmatpush3.bf16.msra.mxu1 %v613_v5  ;;  %554 = vmatprep.subr.bf16.mxu0 %v614_v6  ;;  %v48_v43 = vrot.slane %v47_v34, 4  ;;  %v58_v44 = vrot.slane %v57_v35, 4  ;;  %v80_v45 = vrot.slane %v78_v36, 4  ;;  %v86_v47 = vrot.slane %v84_v37, 5  ;;  %v628_v5 = vld [vmem:[%s819_s1 + $0xa8] sm:$0xff]  }
   0xd   :  { %574 = vmatprep.subr.bf16.mxu1 %v615_v7  ;;  %v71_v46 = vor.u32 %v70_v40, %v67_v39  ;;  %v325_v53 = vrot.slane %v698_v13, 5  ;;  %v328_v55 = vrot.slane %v703_v14, 5  ;;  %v496_v2 = vcombine.low %v712_v19, %v723_v23  ;;  %v633_v14 = vld [vmem:[%s819_s1 + $0x80] sm:$0xff]  }
   0xe   :  { %v53_v50 = vsel %vm740_vm3, %v48_v43, %v52_v27  ;;  %v63_v51 = vsel %vm740_vm3, %v58_v44, %v62_v29  ;;  %v81_v52 = vor.u32 %v80_v45, %v76_v41  ;;  %v506_v12 = vrot.slane %v712_v19, 9  ;;  %v517_v27 = vld [vmem:[%s821_s2] ss:$0 sm:$0xff] }
   0xf   :  { %555 = vmatpush3.bf16.msra.mxu0 %v614_v6  ;;  %v485_v54 = vcombine.low %v53_v50, %v63_v51  ;;  %v72_v56 = vrot.slane %v71_v46, 4  ;;  %v327_v61 = vrot.slane %v325_v53, 4  ;;  %v326_v63 = vsel %vm759_vm5, %v505_v48, %v325_v53  ;;  %v629_v6 = vld [vmem:[%s819_s1 + $0xa0] sm:$0xff]  }
  0x10   :  { %575 = vmatpush3.bf16.msra.mxu1 %v615_v7  ;;  %556 = vmatprep.subr.bf16.mxu0 %v616_v8  ;;  %v82_v58 = vrot.slane %v81_v52, 4  ;;  %v630_v7 = vld [vmem:[%s819_s1 + $0x98] sm:$0xff]  }
  0x11   :  { %576 = vmatprep.subr.bf16.mxu1 %v617_v9  ;;  %v77_v59 = vsel %vm740_vm3, %v72_v56, %v76_v41  ;;  %564 = vmatprep.mubr.bf16.mxu0 %v485_v54  ;;  %v329_v1 = vsel %vm759_vm5, %v327_v61, %v328_v55 }
  0x12   :  { %v87_v62 = vsel %vm740_vm3, %v82_v58, %v86_v47  ;;  %v507_v4 = vcombine.low %v326_v63, %v329_v1 }
  0x13   :  { %557 = vmatpush3.bf16.msra.mxu0 %v616_v8  ;;  %v486_v0 = vcombine.low %v77_v59, %v87_v62  ;;  %v631_v8 = vld [vmem:[%s819_s1 + $0x90] sm:$0xff]  }
  0x14   :  { %577 = vmatpush3.bf16.msra.mxu1 %v617_v9  ;;  %558 = vmatprep.subr.bf16.mxu0 %v618_v10  ;;  %v332_v9 = vrot.slane %v723_v23, 5 }
  0x15   :  { %578 = vmatprep.subr.bf16.mxu1 %v619_v11 }
  0x16   :  { %v334_v13 = vrot.slane %v332_v9, 4  ;;  %v333_v15 = vsel %vm759_vm5, %v506_v12, %v332_v9 }
  0x17   :  { %559 = vmatpush3.bf16.msra.mxu0 %v618_v10  ;;  %v632_v10 = vld [vmem:[%s819_s1 + $0x88] sm:$0xff]  }
  0x18   :  { %579 = vmatpush3.bf16.msra.mxu1 %v619_v11  ;;  %560 = vmatprep.subr.bf16.mxu0 %v620_v20  ;;  %v335_v11 = vrot.slane %v728_v24, 5 }
  0x19   :  { %580 = vmatprep.subr.bf16.mxu1 %v621_v33 }
  0x1a   :  { %v336_v16 = vsel %vm759_vm5, %v334_v13, %v335_v11 }
  0x1b   :  { %561 = vmatpush3.bf16.msra.mxu0 %v620_v20  ;;  %v508_v17 = vcombine.low %v333_v15, %v336_v16 }
  0x1c   :  { %581 = vmatpush3.bf16.msra.mxu1 %v621_v33  ;;  %562 = vmatprep.subr.bf16.mxu0 %v622_v42 }
  0x1d   :  { %582 = vmatprep.subr.bf16.mxu1 %v623_v49 }
  0x1f   :  { %563 = vmatpush3.bf16.msra.mxu0 %v622_v42 }
  0x20   :  { %583 = vmatpush3.bf16.msra.mxu1 %v623_v49  ;;  %588 = vmatprep.subr.bf16.mxu0 %v626_v60 }
  0x22   :  { %565 = vmatmul.mubr.bf16.vlgmr.msra.gmra.mxu0 %v486_v0 }
  0x23   :  { %585 = vmatmul.mubr.bf16.vlgmr.msra.gmra.mxu1 %v496_v2  ;;  %589 = vmatpush3.bf16.msra.mxu0 %v626_v60 }
  0x24   :  { %590 = vmatprep.subr.bf16.mxu0 %v627_v3  ;;  %604 = vmatprep.mubr.bf16.mxu0 %v507_v4 }
  0x27   :  { %591 = vmatpush3.bf16.msra.mxu0 %v627_v3 }
  0x28   :  { %592 = vmatprep.subr.bf16.mxu0 %v628_v5 }
  0x2b   :  { %593 = vmatpush3.bf16.msra.mxu0 %v628_v5 }
  0x2c   :  { %594 = vmatprep.subr.bf16.mxu0 %v629_v6 }
  0x2f   :  { %595 = vmatpush3.bf16.msra.mxu0 %v629_v6 }
  0x30   :  { %596 = vmatprep.subr.bf16.mxu0 %v630_v7 }
  0x33   :  { %597 = vmatpush3.bf16.msra.mxu0 %v630_v7 }
  0x34   :  { %598 = vmatprep.subr.bf16.mxu0 %v631_v8 }
  0x37   :  { %599 = vmatpush3.bf16.msra.mxu0 %v631_v8 }
  0x38   :  { %600 = vmatprep.subr.bf16.mxu0 %v632_v10 }
  0x3b   :  { %601 = vmatpush3.bf16.msra.mxu0 %v632_v10 }
  0x3c   :  { %602 = vmatprep.subr.bf16.mxu0 %v633_v14 }
  0x3f   :  { %603 = vmatpush3.bf16.msra.mxu0 %v633_v14 }
  0x42   :  { %605 = vmatmul.mubr.bf16.vlgmr.msra.gmra.mxu0 %v508_v17 }
  0xe2   :  { %v566_v18 = vpop.f32.mrf.mxu0 }
  0xe3   :  { %v586_v20 = vpop.f32.mrf.mxu1 }
  0xe4   :  { %v194_v19 = vpop.f32.mrf.mxu0  ;;  %v312_v25 = vadd.f32 %v586_v20, %v566_v18 }
  0xe5   :  { %v303_v21 = vpop.f32.mrf.mxu1 }
  0xe6   :  { %v567_v22 = vpop.f32.mrf.mxu0  ;;  %v304_v28 = vadd.f32 %v303_v21, %v194_v19 }
  0xe7   :  { %v587_v23 = vpop.f32.mrf.mxu1 }
  0xe8   :  { %v197_v24 = vpop.f32.mrf.mxu0  ;;  %v315_v32 = vadd.f32 %v587_v23, %v567_v22 }
  0xe9   :  { %v306_v30 = vpop.f32.mrf.mxu1 }
  0xea   :  { %v307_v36 = vadd.f32 %v306_v30, %v197_v24 }
 0x102   :  { %v606_v26 = vpop.f32.mrf.mxu0 }
 0x103   :  { %v460_v29 = vadd.f32 %v606_v26, %v312_v25 }
 0x104   :  { %v443_v31 = vpop.f32.mrf.mxu0 }
 0x105   :  { %v471_v33 = vadd.f32 %v517_v27, %v460_v29  ;;  %v458_v34 = vadd.f32 %v443_v31, %v304_v28 }
 0x106   :  { %v607_v35 = vpop.f32.mrf.mxu0 }
 0x107   :  { %v475_v37 = vmax.f32 %v471_v33, 0.0  ;;  %v469_v38 = vadd.f32 %v517_v27, %v458_v34  ;;  %v461_v39 = vadd.f32 %v607_v35, %v315_v32 }
 0x108   :  { %v446_v40 = vpop.f32.mrf.mxu0 }
 0x109   :  { %479 = vst [vmem:[%s822_s3 + $0x10] sm:$0xff] %v475_v37  ;;  %v473_v41 = vmax.f32 %v469_v38, 0.0  ;;  %v472_v42 = vadd.f32 %v517_v27, %v461_v39  ;;  %v459_v43 = vadd.f32 %v446_v40, %v307_v36 }
 0x10b   :  { %477 = vst [vmem:[%s822_s3] sm:$0xff] %v473_v41  ;;  %v476_v44 = vmax.f32 %v472_v42, 0.0  ;;  %v470_v45 = vadd.f32 %v517_v27, %v459_v43 }
 0x10d   :  { %480 = vst [vmem:[%s822_s3 + $0x18] sm:$0xff] %v476_v44  ;;  %v474_v46 = vmax.f32 %v470_v45, 0.0 }
 0x10f   :  { %478 = vst [vmem:[%s822_s3 + $0x8] sm:$0xff] %v474_v46 }

</bundles_post_ra>
